<compile_context>
chip_gen: v7x
topology: tpu7x:2x2x1
jax: 0.10.0
libtpu: 0.0.40
codegen_flags: <defaults>
</compile_context>

<pallas_src>
import functools
import math

import jax
import jax.numpy as jnp
from jax import lax
from jax.experimental import pallas as pl
from jax.experimental.pallas import tpu as pltpu


# ----------------------------------------------------------------------------
# Per-generation budgets (VMEM scoped limit, projection row tile)
# ----------------------------------------------------------------------------

def _chip_budget():
    try:
        cap = int(pltpu.get_tpu_info().vmem_capacity_bytes)
    except Exception:
        cap = 64 * 1024 * 1024                      # conservative (v7x-class) fallback
    if cap >= 100 * 1024 * 1024:                    # v5e / v6e: 128 MiB physical VMEM
        return 96 * 1024 * 1024, 512
    return 48 * 1024 * 1024, 256                    # v7x-class: 64 MiB physical VMEM


_VMEM_LIMIT, _BLOCK_ROWS = _chip_budget()


# ----------------------------------------------------------------------------
# Kernel 1: fused LayerNorm + (Q|K|V) projection.  The LN affine is folded into
# the weight/bias by the wrapper; kernel computes z = (x-mu)*rsqrt(var+eps); z@W'+b'
# and stores q / k / v as three separate lane-dense (bm, D) blocks.
# ----------------------------------------------------------------------------

def _ln_qkv_kernel(x_ref, w_ref, b_ref, q_ref, k_ref, v_ref, *, eps, dim, compute_dtype):
    x = x_ref[...].astype(jnp.float32)                                # (bm, D)
    mu = jnp.mean(x, axis=-1, keepdims=True)
    var = jnp.mean(jnp.square(x - mu), axis=-1, keepdims=True)
    z = ((x - mu) * lax.rsqrt(var + eps)).astype(compute_dtype)
    acc = jnp.dot(z, w_ref[...], preferred_element_type=jnp.float32) + b_ref[...]
    q_ref[...] = acc[:, :dim].astype(q_ref.dtype)
    k_ref[...] = acc[:, dim:2 * dim].astype(k_ref.dtype)
    v_ref[...] = acc[:, 2 * dim:].astype(v_ref.dtype)


def ln_qkv(x2d, w_fused, b_fused, *, dim, compute_dtype, out_dtype):
    M, D = x2d.shape
    N = w_fused.shape[1]
    bm = min(_BLOCK_ROWS, M)
    return pl.pallas_call(
        functools.partial(_ln_qkv_kernel, eps=1e-5, dim=dim, compute_dtype=compute_dtype),
        out_shape=tuple(jax.ShapeDtypeStruct((M, dim), out_dtype) for _ in range(3)),
        grid=(pl.cdiv(M, bm),),                     # boundary blocks masked on store
        in_specs=[pl.BlockSpec((bm, D), lambda i: (i, 0)),
                  pl.BlockSpec((D, N), lambda i: (0, 0)),             # resident fused weight
                  pl.BlockSpec((1, N), lambda i: (0, 0))],
        out_specs=tuple(pl.BlockSpec((bm, dim), lambda i: (i, 0)) for _ in range(3)),
        compiler_params=pltpu.CompilerParams(
            dimension_semantics=("parallel",),
            vmem_limit_bytes=_VMEM_LIMIT),
    )(x2d, w_fused, b_fused)


# ----------------------------------------------------------------------------
# Kernel 2: bias-free linear (positional projection pos_pr)
# ----------------------------------------------------------------------------

def _linear_kernel(x_ref, w_ref, o_ref, *, compute_dtype):
    o_ref[...] = jnp.dot(x_ref[...].astype(compute_dtype), w_ref[...],
                         preferred_element_type=jnp.float32).astype(o_ref.dtype)


def linear_nobias(x2d, w, *, compute_dtype, out_dtype):
    M, K = x2d.shape
    N = w.shape[1]
    bm = min(_BLOCK_ROWS, M)
    return pl.pallas_call(
        functools.partial(_linear_kernel, compute_dtype=compute_dtype),
        out_shape=jax.ShapeDtypeStruct((M, N), out_dtype),
        grid=(pl.cdiv(M, bm),),
        in_specs=[pl.BlockSpec((bm, K), lambda i: (i, 0)),
                  pl.BlockSpec((K, N), lambda i: (0, 0))],
        out_specs=pl.BlockSpec((bm, N), lambda i: (i, 0)),
        compiler_params=pltpu.CompilerParams(
            dimension_semantics=("parallel",),
            vmem_limit_bytes=_VMEM_LIMIT),
    )(x2d, w)


# ----------------------------------------------------------------------------
# Kernel 3: fused relative attention + output projection, per (batch, head-group):
#   content scores + positional scores -> in-VMEM relative shift -> softmax -> @v
#   -> @ Wo-row-block accumulated into a resident f32 (S, D) scratch.
#   The (S, S) scores never touch HBM; the (S, D) attention activation never touches HBM.
# ----------------------------------------------------------------------------

def _roll_right_lanes(x, s):
    """out[:, j] = x[:, (j - s) % n]  (static cyclic roll along the last axis)."""
    n = x.shape[-1]
    s = s % n
    if s == 0:
        return x
    return jnp.concatenate([x[:, n - s:], x[:, :n - s]], axis=-1)


def _relative_shift_in_vmem(ps, masks, use_strided_roll):
    """In-VMEM equivalent of RelativeAttn.relative_shift on one (S, S) score tile.

    Closed form of the reference concat/reshape/slice trick:
        R[i, :]       = roll_right(ps[i, :], i + 1)
        shifted[i, j] = R[i, j]      if j <= i
                        0            if j == i + 1
                        R[i + 1, j]  otherwise
    The per-row (i + 1) roll is a single strided XLU rotate when S % 128 == 0,
    otherwise a log2(S) cascade of static conditional lane rolls.
    """
    keep_lower, zero_band, bit_masks = masks
    if use_strided_roll:
        r = pltpu.roll(ps, shift=1, axis=1, stride=1, stride_axis=0)   # one XLU op
    else:
        r = _roll_right_lanes(ps, 1)                                   # unconditional +1
        for bit, mask in enumerate(bit_masks):                         # + row index bits
            r = jnp.where(mask, _roll_right_lanes(r, 1 << bit), r)
    r_up = jnp.concatenate([r[1:, :], r[:1, :]], axis=0)               # R[i+1, :] at row i
    return jnp.where(keep_lower, r, jnp.where(zero_band, 0.0, r_up))


def _rel_attn_kernel(q_ref, k_ref, v_ref, pe_ref, u_ref, vb_ref, wo_ref, bo_ref,
                     o_ref, acc_ref, *, heads_in_group, dh, scale,
                     compute_dtype, approx_recip, use_strided_roll):
    g = pl.program_id(1)
    S = q_ref.shape[0]

    @pl.when(g == 0)
    def _():                                             # init accumulator with out-proj bias
        acc_ref[...] = jnp.broadcast_to(bo_ref[...], acc_ref.shape).astype(jnp.float32)

    # relative-shift masks, hoisted out of the head loop
    row = lax.broadcasted_iota(jnp.int32, (S, S), 0)
    col = lax.broadcasted_iota(jnp.int32, (S, S), 1)
    keep_lower = col <= row
    zero_band = col == row + 1
    bit_masks = []
    if not use_strided_roll:
        row1 = lax.broadcasted_iota(jnp.int32, (S, 1), 0)
        bit = 0
        while (1 << bit) < S:
            bit_masks.append(((row1 >> bit) & 1) == 1)
            bit += 1
    masks = (keep_lower, zero_band, tuple(bit_masks))

    # whole head-group slabs (lane-aligned ref reads; per-head slices are on values)
    q_g = q_ref[...].astype(jnp.float32)                 # (S, gw)
    k_g = k_ref[...].astype(compute_dtype)
    v_g = v_ref[...].astype(compute_dtype)
    pe_g = pe_ref[...].astype(compute_dtype)
    u_g = u_ref[...].astype(jnp.float32)                 # (1, gw)
    vb_g = vb_ref[...].astype(jnp.float32)

    head_outs = []
    for j in range(heads_in_group):                      # small static loop (gw <= 128 lanes)
        lo = j * dh
        q = q_g[:, lo:lo + dh]
        k = k_g[:, lo:lo + dh]
        v = v_g[:, lo:lo + dh]
        pe_h = pe_g[:, lo:lo + dh]
        u_h = u_g[:, lo:lo + dh]
        vb_h = vb_g[:, lo:lo + dh]

        # fold 1/sqrt(dim) into the small (S, dh) adds (no S^2 multiply later)
        qu = ((q + u_h) * scale).astype(compute_dtype)
        qv = ((q + vb_h) * scale).astype(compute_dtype)

        s = lax.dot_general(qu, k, (((1,), (1,)), ((), ())),
                            preferred_element_type=jnp.float32)        # (S, S) content
        ps = lax.dot_general(qv, pe_h, (((1,), (1,)), ((), ())),
                             preferred_element_type=jnp.float32)       # (S, S) positional
        logits = s + _relative_shift_in_vmem(ps, masks, use_strided_roll)

        m = jnp.max(logits, axis=-1, keepdims=True)
        e = jnp.exp(logits - m)
        denom = jnp.sum(e, axis=-1, keepdims=True)
        p = e * pl.reciprocal(denom, approx=approx_recip)              # EUP divide
        head_outs.append(jnp.dot(p.astype(compute_dtype), v,
                                 preferred_element_type=jnp.float32))  # (S, dh)

    # one lane-dense (S, gw) group result, folded straight into the fused output
    # projection: acc += attn_group @ Wo[g*gw:(g+1)*gw, :].  Partial head outputs and
    # score temporaries die here each grid step (bounded live ranges).
    grp = jnp.concatenate(head_outs, axis=-1).astype(compute_dtype)
    acc_ref[...] += jnp.dot(grp, wo_ref[...], preferred_element_type=jnp.float32)

    @pl.when(g == pl.num_programs(1) - 1)
    def _():
        o_ref[...] = acc_ref[...].astype(o_ref.dtype)


def _head_grouping(n_heads, dh, dim):
    """Heads per grid step so that the group lane width is 128-aligned (or the full dim)."""
    hg = max(1, min(n_heads, 128 // dh)) if dh < 128 else 1
    while n_heads % hg:
        hg -= 1
    gw = hg * dh
    if gw % 128 and gw != dim:
        hg, gw = n_heads, dim
    return hg, gw


def rel_attention_out(q, k, v, pe, u_flat, vb_flat, wo, bo, *, n_heads, scale,
                      compute_dtype, out_dtype, relative_shift_impl="auto"):
    B, S, D = q.shape
    dh = D // n_heads
    hg, gw = _head_grouping(n_heads, dh, D)
    n_groups = D // gw
    if relative_shift_impl == "auto":
        use_strided = (S % 128 == 0)
    else:
        use_strided = (relative_shift_impl == "strided")
    approx = jnp.dtype(compute_dtype) == jnp.dtype(jnp.bfloat16)

    kern = functools.partial(
        _rel_attn_kernel, heads_in_group=hg, dh=dh, scale=scale,
        compute_dtype=compute_dtype, approx_recip=bool(approx),
        use_strided_roll=bool(use_strided))

    return pl.pallas_call(
        kern,
        out_shape=jax.ShapeDtypeStruct((B, S, D), out_dtype),
        grid=(B, n_groups),                            # batch parallel; group = Wo reduction
        in_specs=[pl.BlockSpec((None, S, gw), lambda b, g: (b, 0, g)),   # q
                  pl.BlockSpec((None, S, gw), lambda b, g: (b, 0, g)),   # k
                  pl.BlockSpec((None, S, gw), lambda b, g: (b, 0, g)),   # v
                  pl.BlockSpec((S, gw), lambda b, g: (0, g)),            # pe
                  pl.BlockSpec((1, gw), lambda b, g: (0, g)),            # u (flattened)
                  pl.BlockSpec((1, gw), lambda b, g: (0, g)),            # v bias (flattened)
                  pl.BlockSpec((gw, D), lambda b, g: (g, 0)),            # Wo row block
                  pl.BlockSpec((1, D), lambda b, g: (0, 0))],            # bo
        out_specs=pl.BlockSpec((None, S, D), lambda b, g: (b, 0, 0)),
        scratch_shapes=[pltpu.VMEM((S, D), jnp.float32)],
        compiler_params=pltpu.CompilerParams(
            dimension_semantics=("parallel", "arbitrary"),
            vmem_limit_bytes=_VMEM_LIMIT),
    )(q, k, v, pe, u_flat, vb_flat, wo, bo)


# ------------------------------- JAX glue ----------------------------------

def sinusoid_enc(seq, dim):
    # exact port of the buffer construction in RelativeAttn.__init__ (first `seq` rows)
    pos = jnp.arange(seq, dtype=jnp.float32)[:, None]
    div = 10000.0 ** (jnp.arange(0, dim, 2, dtype=jnp.float32) / dim)
    ang = pos / div
    enc = jnp.zeros((seq, dim), jnp.float32)
    enc = enc.at[:, 0::2].set(jnp.sin(ang))
    enc = enc.at[:, 1::2].set(jnp.cos(ang))
    return enc


def relative_shift(pos):
    # reference-only port of RelativeAttn.relative_shift (the kernel does this in VMEM)
    b, h, s1, s2 = pos.shape
    zero = jnp.zeros((b, h, s1, 1), pos.dtype)
    padded = jnp.concatenate([zero, pos], axis=-1).reshape(b, h, s2 + 1, s1)
    return padded[:, :, 1:, :].reshape(b, h, s1, s2)


def init_params(key, dim, n_heads):
    dh = dim // n_heads
    ks = jax.random.split(key, 11)
    w = lambda k: jax.random.normal(k, (dim, dim), jnp.float32) / math.sqrt(dim)
    b = lambda k: jax.random.normal(k, (1, dim), jnp.float32) * 0.02
    return dict(
        wq=w(ks[0]), bq=b(ks[1]),
        wk=w(ks[2]), bk=b(ks[3]),
        wv=w(ks[4]), bv=b(ks[5]),
        wo=w(ks[6]), bo=b(ks[7]),
        wp=w(ks[8]),
        u=jax.random.normal(ks[9], (n_heads, dh), jnp.float32) * 0.1,
        v=jax.random.normal(ks[10], (n_heads, dh), jnp.float32) * 0.1,
        ln_g=jnp.ones((1, dim), jnp.float32),
        ln_b=jnp.zeros((1, dim), jnp.float32),
    )


def relative_attn_forward(x, params, n_heads, *, compute_dtype=jnp.bfloat16,
                          relative_shift_impl="auto"):
    """compute_dtype=bf16 (production default) runs the MXU in bf16 with f32 accumulation
    and f32 LayerNorm/softmax; compute_dtype=f32 is the tight-tolerance validation path."""
    B, S, D = x.shape
    act_dtype = jnp.dtype(compute_dtype)

    # LayerNorm affine folded into the fused (D, 3D) QKV weight (one-time precompute):
    #   W' = diag(gamma) . [Wq|Wk|Wv],   b' = beta . [Wq|Wk|Wv] + [bq|bk|bv]
    wqkv = jnp.concatenate([params["wq"], params["wk"], params["wv"]], axis=1)
    bqkv = jnp.concatenate([params["bq"], params["bk"], params["bv"]], axis=1)
    w_fused = (params["ln_g"].reshape(D, 1) * wqkv).astype(compute_dtype)
    b_fused = params["ln_b"] @ wqkv + bqkv                               # (1, 3D) f32

    q2, k2, v2 = ln_qkv(x.reshape(B * S, D), w_fused, b_fused, dim=D,
                        compute_dtype=compute_dtype, out_dtype=act_dtype)
    q3 = q2.reshape(B, S, D)
    k3 = k2.reshape(B, S, D)
    v3 = v2.reshape(B, S, D)

    # positional embeddings: enc(S, D) @ Wp (pos_pr has no bias)
    pe = linear_nobias(sinusoid_enc(S, D), params["wp"].astype(compute_dtype),
                       compute_dtype=compute_dtype, out_dtype=act_dtype)

    # fused attention: scores + relative shift + softmax + @v + @Wo + bo, no HBM S^2 tensor
    out = rel_attention_out(
        q3, k3, v3, pe,
        params["u"].reshape(1, D).astype(jnp.float32),
        params["v"].reshape(1, D).astype(jnp.float32),
        params["wo"].astype(compute_dtype), params["bo"],
        n_heads=n_heads, scale=1.0 / math.sqrt(D),
        compute_dtype=compute_dtype, out_dtype=jnp.float32,
        relative_shift_impl=relative_shift_impl)
    return out                                   # (B, S, D); dropout: identity (eval mode)


def reference_forward(x, params, n_heads):
    # pure-JAX reference, line-by-line translation of the torch forward (mask=None)
    B, S, D = x.shape
    H, Dh = n_heads, D // n_heads
    mu = x.mean(-1, keepdims=True)
    var = ((x - mu) ** 2).mean(-1, keepdims=True)
    out = (x - mu) / jnp.sqrt(var + 1e-5) * params["ln_g"][0] + params["ln_b"][0]
    enc = sinusoid_enc(S, D)
    pe = (enc @ params["wp"]).reshape(1, S, H, Dh).transpose(0, 2, 3, 1)
    q = (out @ params["wq"] + params["bq"][0]).reshape(B, S, H, Dh)
    k = (out @ params["wk"] + params["bk"][0]).reshape(B, S, H, Dh).transpose(0, 2, 3, 1)
    v = (out @ params["wv"] + params["bv"][0]).reshape(B, S, H, Dh).transpose(0, 2, 1, 3)
    qk = jnp.matmul((q + params["u"]).transpose(0, 2, 1, 3), k)
    ps = jnp.matmul((q + params["v"]).transpose(0, 2, 1, 3), pe)
    ps = relative_shift(ps)
    s = (qk + ps) / math.sqrt(D)
    p = jax.nn.softmax(s, axis=-1)
    o = jnp.matmul(p, v).transpose(0, 2, 1, 3).reshape(B, S, D)
    return o @ params["wo"] + params["bo"][0]


if __name__ == "__main__":
    key = jax.random.PRNGKey(0)
    kx, kp, kx2, kp2 = jax.random.split(key, 4)

    # --- small shape: exercises the bit-mask relative-shift fallback (S not lane-aligned)
    B, S, D, H = 2, 16, 32, 4
    x = jax.random.normal(kx, (B, S, D), jnp.float32)
    params = init_params(kp, D, H)
    ref = reference_forward(x, params, H)

    out = jax.block_until_ready(relative_attn_forward(x, params, H,
                                                      compute_dtype=jnp.float32))
    assert out.shape == (B, S, D)
    err = float(jnp.max(jnp.abs(out - ref)))
    assert jnp.allclose(out, ref, rtol=1e-3, atol=1e-3), f"f32 max_err={err}"

    out_bf = jax.block_until_ready(relative_attn_forward(x, params, H,
                                                         compute_dtype=jnp.bfloat16))
    err_bf = float(jnp.max(jnp.abs(out_bf - ref)))
    assert jnp.allclose(out_bf, ref, rtol=5e-2, atol=5e-2), f"bf16 max_err={err_bf}"

    # --- lane-aligned shape: exercises the single strided-roll relative shift
    B2, S2, D2, H2 = 2, 128, 128, 4
    x2 = jax.random.normal(kx2, (B2, S2, D2), jnp.float32)
    params2 = init_params(kp2, D2, H2)
    ref2 = reference_forward(x2, params2, H2)
    try:
        out2 = jax.block_until_ready(relative_attn_forward(x2, params2, H2,
                                                           compute_dtype=jnp.float32))
    except Exception:
        # strided pltpu.roll unavailable on this backend -> bit-mask fallback path
        out2 = jax.block_until_ready(relative_attn_forward(
            x2, params2, H2, compute_dtype=jnp.float32, relative_shift_impl="masks"))
    err2 = float(jnp.max(jnp.abs(out2 - ref2)))
    assert jnp.allclose(out2, ref2, rtol=2e-3, atol=2e-3), f"f32(S=128) max_err={err2}"

    print("KERNEL_OK")
</pallas_src>

<mosaic_0001>
module attributes {stable_mosaic.version = 11 : i64} {
  func.func @_ln_qkv_kernel(%arg0: i32, %arg1: memref<32x32xf32, #tpu.memory_space<vmem>>, %arg2: memref<32x96xf32, #tpu.memory_space<vmem>>, %arg3: memref<1x96xf32, #tpu.memory_space<vmem>>, %arg4: memref<32x32xf32, #tpu.memory_space<vmem>>, %arg5: memref<32x32xf32, #tpu.memory_space<vmem>>, %arg6: memref<32x32xf32, #tpu.memory_space<vmem>>) attributes {dimension_semantics = [#tpu.dimension_semantics<parallel>], iteration_bounds = array<i64: 1>, scalar_prefetch = 0 : i64, scratch_operands = 0 : i64, tpu.core_type = #tpu.core_type<tc>, window_params = [{transform_indices = @transform_0, window_bounds = array<i64: 32, 32>}, {pipeline_mode = #tpu.pipeline_mode<synchronous>, transform_indices = @transform_1, window_bounds = array<i64: 32, 96>}, {pipeline_mode = #tpu.pipeline_mode<synchronous>, transform_indices = @transform_2, window_bounds = array<i64: 1, 96>}, {transform_indices = @transform_3, window_bounds = array<i64: 32, 32>}, {transform_indices = @transform_4, window_bounds = array<i64: 32, 32>}, {transform_indices = @transform_5, window_bounds = array<i64: 32, 32>}]} {
    %c0 = arith.constant 0 : index
    %c0_0 = arith.constant 0 : index
    %0 = vector.load %arg1[%c0, %c0_0] : memref<32x32xf32, #tpu.memory_space<vmem>>, vector<32x32xf32>
    %cst = arith.constant dense<0.000000e+00> : vector<32xf32>
    %1 = vector.multi_reduction <add>, %0, %cst [1] : vector<32x32xf32> to vector<32xf32>
    %2 = vector.shape_cast %1 : vector<32xf32> to vector<32x1xf32>
    %cst_1 = arith.constant 3.200000e+01 : f32
    %3 = vector.broadcast %cst_1 : f32 to vector<32x1xf32>
    %4 = arith.divf %2, %3 : vector<32x1xf32>
    %5 = vector.broadcast %4 : vector<32x1xf32> to vector<32x32xf32>
    %6 = arith.subf %0, %5 : vector<32x32xf32>
    %7 = arith.mulf %6, %6 : vector<32x32xf32>
    %cst_2 = arith.constant dense<0.000000e+00> : vector<32xf32>
    %8 = vector.multi_reduction <add>, %7, %cst_2 [1] : vector<32x32xf32> to vector<32xf32>
    %9 = vector.shape_cast %8 : vector<32xf32> to vector<32x1xf32>
    %cst_3 = arith.constant 3.200000e+01 : f32
    %10 = vector.broadcast %cst_3 : f32 to vector<32x1xf32>
    %11 = arith.divf %9, %10 : vector<32x1xf32>
    %12 = vector.broadcast %4 : vector<32x1xf32> to vector<32x32xf32>
    %13 = arith.subf %0, %12 : vector<32x32xf32>
    %cst_4 = arith.constant 9.99999974E-6 : f32
    %14 = vector.broadcast %cst_4 : f32 to vector<32x1xf32>
    %15 = arith.addf %11, %14 : vector<32x1xf32>
    %16 = math.rsqrt %15 : vector<32x1xf32>
    %17 = vector.broadcast %16 : vector<32x1xf32> to vector<32x32xf32>
    %18 = arith.mulf %13, %17 : vector<32x32xf32>
    %c0_5 = arith.constant 0 : index
    %c0_6 = arith.constant 0 : index
    %19 = vector.load %arg2[%c0_5, %c0_6] : memref<32x96xf32, #tpu.memory_space<vmem>>, vector<32x96xf32>
    %cst_7 = arith.constant dense<0.000000e+00> : vector<32x96xf32>
    %20 = tpu.matmul %18, %19, %cst_7 {dimension_numbers = #tpu.dot_dimension_numbers<[1], [0], [0], [1], [0, 0, 1, 1], [], []>} : vector<32x32xf32>, vector<32x96xf32>, vector<32x96xf32> -> vector<32x96xf32>
    %c0_8 = arith.constant 0 : index
    %c0_9 = arith.constant 0 : index
    %21 = vector.load %arg3[%c0_8, %c0_9] : memref<1x96xf32, #tpu.memory_space<vmem>>, vector<1x96xf32>
    %22 = vector.broadcast %21 : vector<1x96xf32> to vector<32x96xf32>
    %23 = arith.addf %20, %22 : vector<32x96xf32>
    %24 = vector.extract_strided_slice %23 {offsets = [0, 0], sizes = [32, 32], strides = [1, 1]} : vector<32x96xf32> to vector<32x32xf32>
    %c0_10 = arith.constant 0 : index
    %c0_11 = arith.constant 0 : index
    %25 = vector.load %arg4[%c0_10, %c0_11] : memref<32x32xf32, #tpu.memory_space<vmem>>, vector<32x32xf32>
    tpu.vector_store %arg4[%c0_10, %c0_11], %24 {strides = array<i32>} : memref<32x32xf32, #tpu.memory_space<vmem>>, vector<32x32xf32>,
    %26 = vector.extract_strided_slice %23 {offsets = [0, 32], sizes = [32, 32], strides = [1, 1]} : vector<32x96xf32> to vector<32x32xf32>
    %c0_12 = arith.constant 0 : index
    %c0_13 = arith.constant 0 : index
    %27 = vector.load %arg5[%c0_12, %c0_13] : memref<32x32xf32, #tpu.memory_space<vmem>>, vector<32x32xf32>
    tpu.vector_store %arg5[%c0_12, %c0_13], %26 {strides = array<i32>} : memref<32x32xf32, #tpu.memory_space<vmem>>, vector<32x32xf32>,
    %28 = vector.extract_strided_slice %23 {offsets = [0, 64], sizes = [32, 32], strides = [1, 1]} : vector<32x96xf32> to vector<32x32xf32>
    %c0_14 = arith.constant 0 : index
    %c0_15 = arith.constant 0 : index
    %29 = vector.load %arg6[%c0_14, %c0_15] : memref<32x32xf32, #tpu.memory_space<vmem>>, vector<32x32xf32>
    tpu.vector_store %arg6[%c0_14, %c0_15], %28 {strides = array<i32>} : memref<32x32xf32, #tpu.memory_space<vmem>>, vector<32x32xf32>,
    return
  }
  func.func @transform_0(%arg0: i32) -> (i32, i32) {
    %c0_i32 = arith.constant 0 : i32
    %c0_i32_0 = arith.constant 0 : i32
    return %arg0, %c0_i32 : i32, i32
  }
  func.func @transform_1(%arg0: i32) -> (i32, i32) {
    %c0_i32 = arith.constant 0 : i32
    %c0_i32_0 = arith.constant 0 : i32
    %c0_i32_1 = arith.constant 0 : i32
    return %c0_i32, %c0_i32_0 : i32, i32
  }
  func.func @transform_2(%arg0: i32) -> (i32, i32) {
    %c0_i32 = arith.constant 0 : i32
    %c0_i32_0 = arith.constant 0 : i32
    %c0_i32_1 = arith.constant 0 : i32
    return %c0_i32, %c0_i32_0 : i32, i32
  }
  func.func @transform_3(%arg0: i32) -> (i32, i32) {
    %c0_i32 = arith.constant 0 : i32
    %c0_i32_0 = arith.constant 0 : i32
    return %arg0, %c0_i32 : i32, i32
  }
  func.func @transform_4(%arg0: i32) -> (i32, i32) {
    %c0_i32 = arith.constant 0 : i32
    %c0_i32_0 = arith.constant 0 : i32
    return %arg0, %c0_i32 : i32, i32
  }
  func.func @transform_5(%arg0: i32) -> (i32, i32) {
    %c0_i32 = arith.constant 0 : i32
    %c0_i32_0 = arith.constant 0 : i32
    return %arg0, %c0_i32 : i32, i32
  }
}

</mosaic_0001>

<bundles_post_ra>
// kernel: tpu_custom_call.1
= control target key start
LH: loop header
LB: loop body
LE: loop exit
PB: predicated region body
PF: predicated region fallthrough
CT: control target
= control target key end

     0   :  { %11 = vsyncpa [#allocation3], 0  ;;  %s621_s0 = inlined_call_operand.hbm [shape: f32[32,32], index: 0, kind: input, shape index: {}]   ;;  %s622_s1 = inlined_call_operand.hbm [shape: f32[32,96], index: 1, kind: input, shape index: {}]   ;;  %s623_s2 = inlined_call_operand.vmem [shape: f32[1,96], index: 2, kind: input, shape index: {}]   ;;  %s624_s3 = inlined_call_operand.hbm [shape: f32[32,32], index: 3, kind: output, shape index: {0}]   ;;  %s625_s4 = inlined_call_operand.hbm [shape: f32[32,32], index: 4, kind: output, shape index: {1}]   ;;  %s626_s5 = inlined_call_operand.hbm [shape: f32[32,32], index: 5, kind: output, shape index: {2}]  }
   0x1   :  { %12 = vsyncpa [#allocation6], 0 }
   0x2   :  { %13 = vsyncpa [#allocation4], 0 }
   0x3   :  { %14 = vsyncpa [#allocation9], 0  ;;  %s476_s18 = smov [#allocation2]   ;;  %s358_s22 = scalar_lea.hbm %s621_s0, 512 }
   0x4   :  { %s20_s19 = sshll.u32 %s476_s18, 4  ;;  %p359_p0 = scmp.ne.s32.totalorder %s621_s0, %s358_s22  ;;  %s21_s19 = int_to_ptr.vmem [resolvable:$true] %s20_s19 }
   0x5   :  { %p362_p1 = scmp.lt.u32.totalorder %s358_s22, %s621_s0 }
   0x7   :  { %p364_p2 = pnand %p362_p1, %p359_p0 }
   0x9   :  { %367 = shalt.err (!%p364_p2)
}
   0xa   :  { %s368_s27 = scalar_lea.vmem %s21_s19, 512  ;;  %p373_p4 = scmp.lt.s32.totalorder %s21_s19, %s21_s19 }
   0xb   :  { %p369_p3 = scmp.ne.s32.totalorder %s21_s19, %s368_s27  ;;  %p374_p5 = scmp.lt.s32.totalorder %s368_s27, %s368_s27 }
   0xd   :  { %p375_p6 = por %p374_p5, %p373_p4 }
   0xf   :  { %p376_p7 = pnand %p375_p6, %p369_p3 }
  0x11   :  { %379 = shalt.err (!%p376_p7)
}
  0x12   :  { %s477_s28 = smov 128   ;;  %s478_s29 = smov 8  }
  0x13   :  { %26 = dma.hbm_to_vmem [thread:$0]  %s621_s0, 512, %s21_s19, [#allocation3], %s477_s28, %s477_s28, %s478_s29  }
  0x14   :  { %s479_s7 = smov [#allocation5]   ;;  %s380_s11 = scalar_lea.hbm %s622_s1, 512 }
  0x15   :  { %s32_s8 = sshll.u32 %s479_s7, 4  ;;  %p381_p8 = scmp.ne.s32.totalorder %s622_s1, %s380_s11  ;;  %s33_s8 = int_to_ptr.vmem [resolvable:$true] %s32_s8 }
  0x16   :  { %p384_p9 = scmp.lt.u32.totalorder %s380_s11, %s622_s1 }
  0x18   :  { %p386_p10 = pnand %p384_p9, %p381_p8 }
  0x1a   :  { %389 = shalt.err (!%p386_p10)
}
  0x1b   :  { %s390_s16 = scalar_lea.vmem %s33_s8, 512  ;;  %p395_p12 = scmp.lt.s32.totalorder %s33_s8, %s33_s8 }
  0x1c   :  { %p391_p11 = scmp.ne.s32.totalorder %s33_s8, %s390_s16  ;;  %p396_p13 = scmp.lt.s32.totalorder %s390_s16, %s390_s16 }
  0x1e   :  { %p397_p0 = por %p396_p13, %p395_p12 }
  0x20   :  { %p398_p1 = pnand %p397_p0, %p391_p11 }
  0x22   :  { %401 = shalt.err (!%p398_p1)
}
  0x23   :  { %38 = dma.hbm_to_vmem [thread:$0]  %s622_s1, 512, %s33_s8, [#allocation6], %s477_s28, %s477_s28, %s478_s29  }
  0x24   :  { %468 = dma.done.wait [#allocation3], 512  }
  0x25   :  { %469 = vsyncadd [#allocation3], 4294966784 }
  0x26   :  { %470 = dma.done.wait [#allocation6], 512  }
  0x27   :  { %471 = vsyncadd [#allocation6], 4294966784  ;;  %vm51_vm0 = vcmask 261120   ;;  %v47_v0 = vld [vmem:[#allocation2] sm:$0xff]  ;;  %v48_v1 = vld [vmem:[#allocation2 + $0x8] sm:$0xff]  ;;  %s480_s19 = smov 96  }
  0x28   :  { %v49_v2 = vld [vmem:[#allocation2 + $0x10] sm:$0xff]  ;;  %v52_v3 = vsel %vm51_vm0, %v47_v0, 0.0  ;;  %v55_v4 = vsel %vm51_vm0, %v48_v1, 0.0  ;;  %v50_v5 = vld [vmem:[#allocation2 + $0x18] sm:$0xff]  ;;  %v105_v28 = vld [vmem:[#allocation5] sm:$0xff]  ;;  %s481_s20 = smov [#allocation7]  }
  0x29   :  { %53 = vadd.xlane.f32.xlu0 %v52_v3  ;;  %56 = vadd.xlane.f32.xlu1 %v55_v4  ;;  %v58_v6 = vsel %vm51_vm0, %v49_v2, 0.0  ;;  %v61_v7 = vsel %vm51_vm0, %v50_v5, 0.0  ;;  %v106_v29 = vld [vmem:[#allocation5 + $0x8] sm:$0xff]  ;;  %v107_v31 = vld [vmem:[#allocation5 + $0x10] sm:$0xff]  ;;  %v108_v32 = vld [vmem:[#allocation5 + $0x18] sm:$0xff]  ;;  %s258_s21 = sshll.u32 %s481_s20, 4  ;;  %s259_s21 = int_to_ptr.vmem [resolvable:$true] %s258_s21 }
  0x2a   :  { %v329_v30 = vpack.c.bf16 %v106_v29, %v105_v28  ;;  %v333_v33 = vpack.c.bf16 %v108_v32, %v107_v31  ;;  %v302_v54 = vld [vmem:[%s623_s2] ss:$0 sm:$0xff]  ;;  %s482_s2 = smov 64   ;;  %s402_s22 = scalar_lea.vmem %s259_s21, 512 }
  0x2b   :  { %p403_p2 = scmp.ne.s32.totalorder %s259_s21, %s402_s22  ;;  %p407_p3 = scmp.lt.s32.totalorder %s259_s21, %s259_s21 }
  0x2c   :  { %330 = vmatprep.subr.bf16.mxu0 %v329_v30  ;;  %337 = vmatprep.subr.bf16.mxu1 %v329_v30  ;;  %p408_p4 = scmp.lt.s32.totalorder %s402_s22, %s402_s22 }
  0x2d   :  { %59 = vadd.xlane.f32.xlu0 %v58_v6  ;;  %62 = vadd.xlane.f32.xlu1 %v61_v7 }
  0x2e   :  { %332 = vmatpush3.bf16.msra.mxu0 %v329_v30  ;;  %339 = vmatpush3.bf16.msra.mxu1 %v329_v30  ;;  %p409_p5 = por %p408_p4, %p407_p3 }
  0x2f   :  { %334 = vmatprep.subr.bf16.mxu0 %v333_v33  ;;  %338 = vmatprep.subr.bf16.mxu1 %v333_v33 }
  0x30   :  { %p410_p6 = pnand %p409_p5, %p403_p2 }
  0x32   :  { %336 = vmatpush3.bf16.msra.mxu0 %v333_v33  ;;  %340 = vmatpush3.bf16.msra.mxu1 %v333_v33 }
  0xb6   :  { %v54_v8 = vpop.xlane.xlu0 %53  ;;  %v57_v9 = vpop.xlane.xlu1 %56 }
  0xb7   :  { %v65_v10 = vmul.f32 0.03125, %v54_v8  ;;  %v66_v11 = vmul.f32 0.03125, %v57_v9 }
  0xb9   :  { %v69_v12 = vsub.f32 %v47_v0, %v65_v10  ;;  %v70_v13 = vsub.f32 %v48_v1, %v66_v11 }
  0xba   :  { %v60_v14 = vpop.xlane.xlu0 %59  ;;  %v63_v15 = vpop.xlane.xlu1 %62 }
  0xbb   :  { %v67_v16 = vmul.f32 0.03125, %v60_v14  ;;  %v68_v17 = vmul.f32 0.03125, %v63_v15  ;;  %v73_v18 = vmul.f32 %v69_v12, %v69_v12  ;;  %v74_v19 = vmul.f32 %v70_v13, %v70_v13 }
  0xbd   :  { %v71_v20 = vsub.f32 %v49_v2, %v67_v16  ;;  %v72_v21 = vsub.f32 %v50_v5, %v68_v17  ;;  %v77_v22 = vsel %vm51_vm0, %v73_v18, 0.0  ;;  %v80_v23 = vsel %vm51_vm0, %v74_v19, 0.0 }
  0xbe   :  { %78 = vadd.xlane.f32.xlu0 %v77_v22 }
  0xbf   :  { %v75_v24 = vmul.f32 %v71_v20, %v71_v20  ;;  %v76_v25 = vmul.f32 %v72_v21, %v72_v21 }
  0xc1   :  { %v83_v26 = vsel %vm51_vm0, %v75_v24, 0.0  ;;  %v86_v27 = vsel %vm51_vm0, %v76_v25, 0.0 }
  0xc2   :  { %81 = vadd.xlane.f32.xlu0 %v80_v23  ;;  %84 = vadd.xlane.f32.xlu1 %v83_v26 }
  0xc6   :  { %87 = vadd.xlane.f32.xlu1 %v86_v27 }
 0x14b   :  { %v79_v34 = vpop.xlane.xlu0 %78 }
 0x14c   :  { %v89_v35 = vmul.f32 0.03125, %v79_v34 }
 0x14e   :  { %v93_v36 = vadd.f32 1e-05, %v89_v35 }
 0x14f   :  { %v85_v37 = vpop.xlane.xlu1 %84  ;;  %v82_v38 = vpop.xlane.xlu0 %81 }
 0x150   :  { %350 = vrsqrt.f32 %v93_v36  ;;  %v91_v39 = vmul.f32 0.03125, %v85_v37  ;;  %v90_v40 = vmul.f32 0.03125, %v82_v38 }
 0x152   :  { %v95_v41 = vadd.f32 1e-05, %v91_v39  ;;  %v94_v42 = vadd.f32 1e-05, %v90_v40 }
 0x153   :  { %v88_v43 = vpop.xlane.xlu1 %87 }
 0x154   :  { %352 = vrsqrt.f32 %v95_v41  ;;  %v92_v44 = vmul.f32 0.03125, %v88_v43 }
 0x155   :  { %354 = vrsqrt.f32 %v94_v42 }
 0x156   :  { %v96_v45 = vadd.f32 1e-05, %v92_v44 }
 0x158   :  { %356 = vrsqrt.f32 %v96_v45 }
 0x15a   :  { %v351_v46 = vpop.eup %350 }
 0x15b   :  { %v101_v47 = vmul.f32 %v351_v46, %v69_v12 }
 0x15d   :  { %323 = vmatprep.mubr.msk.f32.mxu0 %vm51_vm0, %v101_v47 }
 0x15e   :  { %v353_v48 = vpop.eup %352 }
 0x15f   :  { %v355_v49 = vpop.eup %354  ;;  %v103_v50 = vmul.f32 %v353_v48, %v71_v20 }
 0x160   :  { %v102_v51 = vmul.f32 %v355_v49, %v70_v13 }
 0x161   :  { %326 = vmatprep.mubr.msk.f32.mxu1 %vm51_vm0, %v103_v50 }
 0x162   :  { %v357_v52 = vpop.eup %356  ;;  %324 = vmatmul.mubr.msk.f32.vlgmr.msra.gmra.mrb[0].mxu0 %vm51_vm0, %v102_v51 }
 0x163   :  { %v104_v53 = vmul.f32 %v357_v52, %v72_v21 }
 0x165   :  { %327 = vmatmul.mubr.msk.f32.vlgmr.msra.gmra.mrb[0].mxu1 %vm51_vm0, %v104_v53 }
 0x235   :  { %v325_v55 = vpop.f32.mrb[0].mxu0 }
 0x236   :  { %v200_v56 = vadd.f32 %v325_v55, %v302_v54  ;;  %v194_v57 = vpop.f32.mrb[1].mxu0 }
 0x237   :  { %v195_v58 = vadd.f32 %v302_v54, %v194_v57 }
 0x238   :  { %214 = vst.msk [vmem:[#allocation7 + $0x8] sm:$0xff] %vm51_vm0, %v200_v56  ;;  %223 = vrot.lane.b32.xlu1 %v200_v56, %s480_s19  ;;  %v328_v59 = vpop.f32.mrb[0].mxu1 }
 0x239   :  { %213 = vst.msk [vmem:[#allocation7] sm:$0xff] %vm51_vm0, %v195_v58  ;;  %v210_v60 = vadd.f32 %v328_v59, %v302_v54  ;;  %221 = vrot.lane.b32.xlu0 %v195_v58, %s480_s19  ;;  %v204_v61 = vpop.f32.mrb[1].mxu1 }
 0x23a   :  { %v205_v62 = vadd.f32 %v302_v54, %v204_v61 }
 0x23b   :  { %216 = vst.msk [vmem:[#allocation7 + $0x18] sm:$0xff] %vm51_vm0, %v210_v60 }
 0x23c   :  { %215 = vst.msk [vmem:[#allocation7 + $0x10] sm:$0xff] %vm51_vm0, %v205_v62  ;;  %227 = vrot.lane.b32.xlu1 %v210_v60, %s480_s19 }
 0x23d   :  { %237 = vrot.lane.b32.xlu0 %v195_v58, %s482_s2 }
 0x23e   :  { %413 = shalt.err (!%p410_p6)
}
 0x23f   :  { %s414_s25 = scalar_lea.hbm %s624_s3, 512 }
 0x240   :  { %p415_p7 = scmp.ne.s32.totalorder %s624_s3, %s414_s25  ;;  %p418_p8 = scmp.lt.u32.totalorder %s414_s25, %s624_s3 }
 0x242   :  { %p420_p9 = pnand %p418_p8, %p415_p7 }
 0x244   :  { %423 = shalt.err (!%p420_p9)
}
 0x245   :  { %264 = dma.vmem_to_hbm [thread:$0]  %s259_s21, 512, %s624_s3, [#allocation4], %s477_s28, %s477_s28, %s478_s29  }
 0x246   :  { %239 = vrot.lane.b32.xlu1 %v200_v56, %s482_s2  ;;  %241 = vrot.lane.b32.xlu0 %v205_v62, %s482_s2  ;;  %s483_s9 = smov [#allocation8]   ;;  %s484_s10 = smov [#allocation10]  }
 0x247   :  { %s270_s3 = sshll.u32 %s483_s9, 4  ;;  %s282_s11 = sshll.u32 %s484_s10, 4  ;;  %s271_s3 = int_to_ptr.vmem [resolvable:$true] %s270_s3  ;;  %s283_s11 = int_to_ptr.vmem [resolvable:$true] %s282_s11 }
 0x248   :  { %s424_s12 = scalar_lea.vmem %s271_s3, 512  ;;  %p429_p11 = scmp.lt.s32.totalorder %s271_s3, %s271_s3 }
 0x249   :  { %p425_p10 = scmp.ne.s32.totalorder %s271_s3, %s424_s12  ;;  %p430_p12 = scmp.lt.s32.totalorder %s424_s12, %s424_s12 }
 0x24a   :  { %225 = vrot.lane.b32.xlu1 %v205_v62, %s480_s19 }
 0x24b   :  { %p431_p13 = por %p430_p12, %p429_p11 }
 0x24d   :  { %p432_p0 = pnand %p431_p13, %p425_p10 }
 0x24e   :  { %243 = vrot.lane.b32.xlu1 %v210_v60, %s482_s2 }
 0x2aa   :  { %v224_v63 = vpop.permute.xlu1 %223 }
 0x2ab   :  { %234 = vst.msk [vmem:[#allocation8 + $0x8] sm:$0xff] %vm51_vm0, %v224_v63  ;;  %v222_v0 = vpop.permute.xlu0 %221 }
 0x2ac   :  { %233 = vst.msk [vmem:[#allocation8] sm:$0xff] %vm51_vm0, %v222_v0 }
 0x2ae   :  { %v228_v1 = vpop.permute.xlu1 %227 }
 0x2af   :  { %236 = vst.msk [vmem:[#allocation8 + $0x18] sm:$0xff] %vm51_vm0, %v228_v1  ;;  %v238_v2 = vpop.permute.xlu0 %237 }
 0x2b0   :  { %249 = vst.msk [vmem:[#allocation10] sm:$0xff] %vm51_vm0, %v238_v2 }
 0x2b8   :  { %v240_v3 = vpop.permute.xlu1 %239  ;;  %v242_v4 = vpop.permute.xlu0 %241 }
 0x2b9   :  { %250 = vst.msk [vmem:[#allocation10 + $0x8] sm:$0xff] %vm51_vm0, %v240_v3  ;;  %251 = vst.msk [vmem:[#allocation10 + $0x10] sm:$0xff] %vm51_vm0, %v242_v4 }
 0x2bc   :  { %v226_v5 = vpop.permute.xlu1 %225 }
 0x2bd   :  { %235 = vst.msk [vmem:[#allocation8 + $0x10] sm:$0xff] %vm51_vm0, %v226_v5 }
 0x2be   :  { %435 = shalt.err (!%p432_p0)
}
 0x2bf   :  { %s436_s15 = scalar_lea.hbm %s625_s4, 512 }
 0x2c0   :  { %p437_p1 = scmp.ne.s32.totalorder %s625_s4, %s436_s15  ;;  %p440_p2 = scmp.lt.u32.totalorder %s436_s15, %s625_s4 }
 0x2c2   :  { %p442_p3 = pnand %p440_p2, %p437_p1 }
 0x2c4   :  { %445 = shalt.err (!%p442_p3)
}
 0x2c5   :  { %276 = dma.vmem_to_hbm [thread:$0]  %s271_s3, 512, %s625_s4, [#allocation9], %s477_s28, %s477_s28, %s478_s29   ;;  %v244_v6 = vpop.permute.xlu1 %243 }
 0x2c6   :  { %252 = vst.msk [vmem:[#allocation10 + $0x18] sm:$0xff] %vm51_vm0, %v244_v6  ;;  %s446_s20 = scalar_lea.vmem %s283_s11, 512  ;;  %p451_p5 = scmp.lt.s32.totalorder %s283_s11, %s283_s11 }
 0x2c7   :  { %p447_p4 = scmp.ne.s32.totalorder %s283_s11, %s446_s20  ;;  %p452_p6 = scmp.lt.s32.totalorder %s446_s20, %s446_s20 }
 0x2c9   :  { %p453_p7 = por %p452_p6, %p451_p5 }
 0x2cb   :  { %p454_p8 = pnand %p453_p7, %p447_p4 }
 0x2cd   :  { %457 = shalt.err (!%p454_p8)
}
 0x2ce   :  { %s458_s22 = scalar_lea.hbm %s626_s5, 512 }
 0x2cf   :  { %p459_p9 = scmp.ne.s32.totalorder %s626_s5, %s458_s22  ;;  %p462_p10 = scmp.lt.u32.totalorder %s458_s22, %s626_s5 }
 0x2d1   :  { %p464_p11 = pnand %p462_p10, %p459_p9 }
 0x2d3   :  { %467 = shalt.err (!%p464_p11)
}
 0x2d4   :  { %288 = dma.vmem_to_hbm [thread:$0]  %s283_s11, 512, %s626_s5, [#allocation9], %s477_s28, %s477_s28, %s478_s29  }
 0x2d5   :  { %472 = dma.done.wait [#allocation4], 512  }
 0x2d6   :  { %473 = vsyncadd [#allocation4], 4294966784 }
 0x2d7   :  { %474 = dma.done.wait [#allocation9], 1024  }
 0x2d8   :  { %475 = vsyncadd [#allocation9], 4294966272 }
 0x2d9   :  { %298 = vsyncpa [#allocation3], 1 }
 0x2da   :  { %299 = vsyncpa [#allocation6], 1 }
 0x2db   :  { %300 = vsyncpa [#allocation4], 1 }
 0x2dc   :  { %301 = vsyncpa [#allocation9], 1 }

</bundles_post_ra>
